<compile_context>
chip_gen: v7x
topology: tpu7x:2x2x1
jax: 0.10.0
libtpu: 0.0.40
codegen_flags: <defaults>
</compile_context>

<pallas_src>
import jax
import jax.numpy as jnp
import numpy as np
from jax.experimental import pallas as pl
from jax.experimental.pallas import tpu as pltpu

LN_EPS = 1e-5  # torch.nn.LayerNorm default eps


# ---------------------------------------------------------------------------
# Fused kernel: [pyramid -> LayerNorm] x K  ->  class projection -> Frobenius readout
# ---------------------------------------------------------------------------
def fused_routing_kernel(x_ref, wcats_ref, gammas_ref, betas_ref,
                         wcls_ref, bcls_ref, seg_ref, segt_ref, o_ref):
    # x_ref:      (N, Bt*M)   batch packed onto the lane axis (lane-dense)
    # wcats_ref:  (K, N, N)   precomposed pyramid matrices
    # gammas_ref: (K, N, Bt*M), betas_ref: (K, N, Bt*M)   LayerNorm affine, tiled over batch lanes
    # wcls_ref:   (C, N), bcls_ref: (C, 1)
    # seg_ref:    (Bt*M, Bt)  lane-segment indicator (column b selects batch b's M lanes)
    # segt_ref:   (Bt, Bt*M)  its transpose (broadcast-back)
    # o_ref:      (1, C, Bt)
    h = x_ref[...]
    seg = seg_ref[...]
    seg_t = segt_ref[...]

    n_cap = h.shape[0]
    bt = seg.shape[1]
    m = h.shape[1] // bt
    inv_nm = 1.0 / float(n_cap * m)
    num_blocks = wcats_ref.shape[0]

    for k in range(num_blocks):                 # static unroll, K is small (=2 here)
        # Entire 4-level pyramid = one (N, N) @ (N, Bt*M) matmul.
        fp = jnp.dot(wcats_ref[k], h, preferred_element_type=jnp.float32)

        # LayerNorm over the full (num_capsule, H, W) slab, per batch item.
        colsum = jnp.sum(fp, axis=0, keepdims=True)                              # (1, Bt*M)
        mean_b = jnp.dot(colsum, seg, preferred_element_type=jnp.float32) * inv_nm   # (1, Bt)
        mean_l = jnp.dot(mean_b, seg_t, preferred_element_type=jnp.float32)      # (1, Bt*M)
        cen = fp - mean_l
        sqsum = jnp.sum(cen * cen, axis=0, keepdims=True)                        # (1, Bt*M)
        var_b = jnp.dot(sqsum, seg, preferred_element_type=jnp.float32) * inv_nm     # (1, Bt)
        rstd_l = jnp.dot(jax.lax.rsqrt(var_b + LN_EPS), seg_t,
                         preferred_element_type=jnp.float32)                     # (1, Bt*M)
        h = cen * rstd_l * gammas_ref[k] + betas_ref[k]

    # GlobalMatrix: capsule->class projection, per-class Frobenius norm over the pose matrix, +bias
    y = jnp.dot(wcls_ref[...], h, preferred_element_type=jnp.float32)            # (C, Bt*M)
    q = jnp.dot(y * y, seg, preferred_element_type=jnp.float32)                  # (C, Bt)
    o_ref[0] = (jnp.sqrt(q) + bcls_ref[...]).astype(o_ref.dtype)


# ---------------------------------------------------------------------------
# Host-side (static) helpers
# ---------------------------------------------------------------------------
def pyramid_sizes(num_capsule, routing_name, rate_list=None):
    if routing_name == 'FPN':
        sizes = ([num_capsule // 2, num_capsule // 4, num_capsule // 8, num_capsule // 8]
                 if rate_list is None else list(rate_list))
    elif routing_name == 'Tiny_FPN':
        rates = [2, 2, 2, 1] if rate_list is None else list(rate_list)
        sizes, cur = [], num_capsule
        for r in rates:
            cur = cur // r
            sizes.append(cur)
    else:
        raise NotImplementedError(f"FPN name {routing_name} should be in ['Tiny_FPN', 'FPN']")
    assert sum(sizes) == num_capsule, "pyramid levels must concatenate back to num_capsule"
    return sizes


def precompose_pyramid(ws):
    # W_cat = concat([W1, W2@W1, W3@W2@W1, W4@W3@W2@W1], axis=0)  -> (N, N), exact (linear).
    comps, acc = [], None
    for w in ws:
        acc = w if acc is None else jnp.dot(w, acc, precision=jax.lax.Precision.HIGHEST)
        comps.append(acc)
    return jnp.concatenate(comps, axis=0)


def _pick_batch_tile(B, M):
    # Whole batch in one lane-packed block when small; otherwise tile the lane axis in clean
    # 128-lane multiples (BlockSpec lane-divisibility rule).
    lanes = 128
    if (B * M) % lanes != 0 or B * M <= lanes:
        return B
    bt = max(1, lanes // M)
    while bt < B:
        if B % bt == 0 and (bt * M) % lanes == 0:
            return bt
        bt += 1
    return B


def init_routing_matrix_params(key, num_capsule, matrix_shape, routing_name_list, num_classes):
    H, W = matrix_shape
    M = H * W
    blocks = []
    for name in routing_name_list:
        sizes = pyramid_sizes(num_capsule, name)
        ws, in_dim = [], num_capsule
        for out_dim in sizes:
            key, sub = jax.random.split(key)
            ws.append(jax.random.normal(sub, (out_dim, in_dim), jnp.float32)
                      * (1.0 / np.sqrt(in_dim)))
            in_dim = out_dim
        blocks.append({'ws': ws,
                       'gamma': jnp.ones((num_capsule, M), jnp.float32),   # LayerNorm defaults
                       'beta': jnp.zeros((num_capsule, M), jnp.float32)})
    key, sub = jax.random.split(key)
    w_cls = (jax.random.normal(sub, (num_classes, num_capsule), jnp.float32)
             * (1.0 / np.sqrt(num_capsule)))
    b_cls = jnp.zeros((num_classes, 1), jnp.float32)
    return {'blocks': blocks, 'w_cls': w_cls, 'b_cls': b_cls}


# ---------------------------------------------------------------------------
# Forward wrapper: pack layout, precompose weights, single pallas_call
# ---------------------------------------------------------------------------
def routing_matrix_forward(x, params):
    B, N, H, W = x.shape
    M = H * W
    blocks = params['blocks']
    K = len(blocks)
    C = params['w_cls'].shape[0]

    bt = _pick_batch_tile(B, M)        # batch items per grid step (all of them here)
    num_tiles = B // bt
    btm = bt * M

    # Static weight prep (costs nothing at runtime relative to the kernel).
    wcats = jnp.stack([precompose_pyramid(blk['ws']) for blk in blocks])        # (K, N, N)
    gammas = jnp.stack([jnp.tile(blk['gamma'], (1, bt)) for blk in blocks])     # (K, N, bt*M)
    betas = jnp.stack([jnp.tile(blk['beta'], (1, bt)) for blk in blocks])       # (K, N, bt*M)

    # Lane-dense packing: (B, N, H, W) -> (N, B*M), batches contiguous in M-wide lane groups.
    x_packed = (x.reshape(B, N, M).astype(jnp.float32)
                 .transpose(1, 0, 2).reshape(N, B * M))

    # Static lane-segment indicator: seg[b*M + m, b] = 1.
    seg_np = np.zeros((btm, bt), np.float32)
    for b in range(bt):
        seg_np[b * M:(b + 1) * M, b] = 1.0
    seg = jnp.asarray(seg_np)
    seg_t = jnp.asarray(seg_np.T)

    out_tcb = pl.pallas_call(
        fused_routing_kernel,
        out_shape=jax.ShapeDtypeStruct((num_tiles, C, bt), jnp.float32),
        grid=(num_tiles,),
        in_specs=[
            pl.BlockSpec((N, btm), lambda t: (0, t)),          # x: lane-blocked over batch tiles
            pl.BlockSpec((K, N, N), lambda t: (0, 0, 0)),      # precomposed pyramid weights
            pl.BlockSpec((K, N, btm), lambda t: (0, 0, 0)),    # gamma (tiled over batch lanes)
            pl.BlockSpec((K, N, btm), lambda t: (0, 0, 0)),    # beta
            pl.BlockSpec((C, N), lambda t: (0, 0)),            # class projection
            pl.BlockSpec((C, 1), lambda t: (0, 0)),            # class bias
            pl.BlockSpec((btm, bt), lambda t: (0, 0)),         # segment indicator
            pl.BlockSpec((bt, btm), lambda t: (0, 0)),         # segment indicator (transposed)
        ],
        out_specs=pl.BlockSpec((1, C, bt), lambda t: (t, 0, 0)),
        compiler_params=pltpu.CompilerParams(
            dimension_semantics=("parallel",),   # lets v7x split batch tiles across its 2 TCs
        ),
    )(x_packed, wcats, gammas, betas, params['w_cls'], params['b_cls'], seg, seg_t)

    # (num_tiles, C, bt) -> (B, C) logits (trivial host glue on a tiny array).
    return out_tcb.transpose(0, 2, 1).reshape(B, C)


# ---------------------------------------------------------------------------
# Pure-JAX reference (module semantics: chained pyramid matmuls, per-batch LN, Frobenius readout)
# ---------------------------------------------------------------------------
def reference_forward(x, params):
    B, N, H, W = x.shape
    h = x.reshape(B, N, H * W).astype(jnp.float32)
    for blk in params['blocks']:
        p, outs = h, []
        for w in blk['ws']:
            p = jnp.einsum('rn,bnm->brm', w, p)
            outs.append(p)
        fp = jnp.concatenate(outs, axis=1)
        mean = fp.mean(axis=(1, 2), keepdims=True)
        var = ((fp - mean) ** 2).mean(axis=(1, 2), keepdims=True)
        h = (fp - mean) / jnp.sqrt(var + LN_EPS) * blk['gamma'][None] + blk['beta'][None]
    y = jnp.einsum('cn,bnm->bcm', params['w_cls'], h)
    return jnp.sqrt(jnp.sum(y * y, axis=-1)) + params['b_cls'][:, 0][None, :]


if __name__ == "__main__":
    jax.config.update("jax_default_matmul_precision", "highest")

    key = jax.random.PRNGKey(0)
    B, num_capsule, num_classes = 2, 16, 10
    matrix_shape = (4, 4)
    routing_name_list = ['FPN', 'Tiny_FPN']

    kx, kp = jax.random.split(key)
    x = jax.random.normal(kx, (B, num_capsule, *matrix_shape), jnp.float32)
    params = init_routing_matrix_params(kp, num_capsule, matrix_shape,
                                        routing_name_list, num_classes)

    fwd = jax.jit(routing_matrix_forward)
    out = jax.block_until_ready(fwd(x, params))
    ref = jax.block_until_ready(reference_forward(x, params))

    assert out.shape == (B, num_classes)
    np.testing.assert_allclose(np.asarray(out), np.asarray(ref), rtol=5e-4, atol=5e-4)
    print("KERNEL_OK")
</pallas_src>

<mosaic_0001>
module attributes {stable_mosaic.version = 11 : i64} {
  func.func @fused_routing_kernel(%arg0: i32, %arg1: memref<16x32xf32, #tpu.memory_space<vmem>>, %arg2: memref<2x16x16xf32, #tpu.memory_space<vmem>>, %arg3: memref<2x16x32xf32, #tpu.memory_space<vmem>>, %arg4: memref<2x16x32xf32, #tpu.memory_space<vmem>>, %arg5: memref<10x16xf32, #tpu.memory_space<vmem>>, %arg6: memref<10x1xf32, #tpu.memory_space<vmem>>, %arg7: memref<32x2xf32, #tpu.memory_space<vmem>>, %arg8: memref<2x32xf32, #tpu.memory_space<vmem>>, %arg9: memref<1x10x2xf32, #tpu.memory_space<vmem>>) attributes {dimension_semantics = [#tpu.dimension_semantics<parallel>], iteration_bounds = array<i64: 1>, scalar_prefetch = 0 : i64, scratch_operands = 0 : i64, tpu.core_type = #tpu.core_type<tc>, window_params = [{transform_indices = @transform_0, window_bounds = array<i64: 16, 32>}, {pipeline_mode = #tpu.pipeline_mode<synchronous>, transform_indices = @transform_1, window_bounds = array<i64: 2, 16, 16>}, {pipeline_mode = #tpu.pipeline_mode<synchronous>, transform_indices = @transform_2, window_bounds = array<i64: 2, 16, 32>}, {pipeline_mode = #tpu.pipeline_mode<synchronous>, transform_indices = @transform_3, window_bounds = array<i64: 2, 16, 32>}, {pipeline_mode = #tpu.pipeline_mode<synchronous>, transform_indices = @transform_4, window_bounds = array<i64: 10, 16>}, {pipeline_mode = #tpu.pipeline_mode<synchronous>, transform_indices = @transform_5, window_bounds = array<i64: 10, 1>}, {pipeline_mode = #tpu.pipeline_mode<synchronous>, transform_indices = @transform_6, window_bounds = array<i64: 32, 2>}, {pipeline_mode = #tpu.pipeline_mode<synchronous>, transform_indices = @transform_7, window_bounds = array<i64: 2, 32>}, {transform_indices = @transform_8, window_bounds = array<i64: 1, 10, 2>}]} {
    %c0 = arith.constant 0 : index
    %c0_0 = arith.constant 0 : index
    %0 = vector.load %arg1[%c0, %c0_0] : memref<16x32xf32, #tpu.memory_space<vmem>>, vector<16x32xf32>
    %c0_1 = arith.constant 0 : index
    %c0_2 = arith.constant 0 : index
    %1 = vector.load %arg7[%c0_1, %c0_2] : memref<32x2xf32, #tpu.memory_space<vmem>>, vector<32x2xf32>
    %c0_3 = arith.constant 0 : index
    %c0_4 = arith.constant 0 : index
    %2 = vector.load %arg8[%c0_3, %c0_4] : memref<2x32xf32, #tpu.memory_space<vmem>>, vector<2x32xf32>
    %c0_5 = arith.constant 0 : index
    %c0_6 = arith.constant 0 : index
    %c0_7 = arith.constant 0 : index
    %3 = vector.load %arg2[%c0_5, %c0_6, %c0_7] : memref<2x16x16xf32, #tpu.memory_space<vmem>>, vector<1x16x16xf32>
    %4 = vector.shape_cast %3 : vector<1x16x16xf32> to vector<16x16xf32>
    %cst = arith.constant dense<0.000000e+00> : vector<16x32xf32>
    %5 = tpu.matmul %4, %0, %cst {dimension_numbers = #tpu.dot_dimension_numbers<[1], [0], [0], [1], [0, 0, 1, 1], [], []>, precision = #tpu.contract_precision<fp32>} : vector<16x16xf32>, vector<16x32xf32>, vector<16x32xf32> -> vector<16x32xf32>
    %cst_8 = arith.constant dense<0.000000e+00> : vector<32xf32>
    %6 = vector.multi_reduction <add>, %5, %cst_8 [0] : vector<16x32xf32> to vector<32xf32>
    %7 = vector.shape_cast %6 : vector<32xf32> to vector<1x32xf32>
    %cst_9 = arith.constant dense<0.000000e+00> : vector<1x2xf32>
    %8 = tpu.matmul %7, %1, %cst_9 {dimension_numbers = #tpu.dot_dimension_numbers<[1], [0], [0], [1], [0, 0, 1, 1], [], []>, precision = #tpu.contract_precision<fp32>} : vector<1x32xf32>, vector<32x2xf32>, vector<1x2xf32> -> vector<1x2xf32>
    %cst_10 = arith.constant 3.906250e-03 : f32
    %9 = vector.broadcast %cst_10 : f32 to vector<1x2xf32>
    %10 = arith.mulf %8, %9 : vector<1x2xf32>
    %cst_11 = arith.constant dense<0.000000e+00> : vector<1x32xf32>
    %11 = tpu.matmul %10, %2, %cst_11 {dimension_numbers = #tpu.dot_dimension_numbers<[1], [0], [0], [1], [0, 0, 1, 1], [], []>, precision = #tpu.contract_precision<fp32>} : vector<1x2xf32>, vector<2x32xf32>, vector<1x32xf32> -> vector<1x32xf32>
    %12 = vector.broadcast %11 : vector<1x32xf32> to vector<16x32xf32>
    %13 = arith.subf %5, %12 : vector<16x32xf32>
    %14 = arith.mulf %13, %13 : vector<16x32xf32>
    %cst_12 = arith.constant dense<0.000000e+00> : vector<32xf32>
    %15 = vector.multi_reduction <add>, %14, %cst_12 [0] : vector<16x32xf32> to vector<32xf32>
    %16 = vector.shape_cast %15 : vector<32xf32> to vector<1x32xf32>
    %cst_13 = arith.constant dense<0.000000e+00> : vector<1x2xf32>
    %17 = tpu.matmul %16, %1, %cst_13 {dimension_numbers = #tpu.dot_dimension_numbers<[1], [0], [0], [1], [0, 0, 1, 1], [], []>, precision = #tpu.contract_precision<fp32>} : vector<1x32xf32>, vector<32x2xf32>, vector<1x2xf32> -> vector<1x2xf32>
    %cst_14 = arith.constant 3.906250e-03 : f32
    %18 = vector.broadcast %cst_14 : f32 to vector<1x2xf32>
    %19 = arith.mulf %17, %18 : vector<1x2xf32>
    %cst_15 = arith.constant 9.99999974E-6 : f32
    %20 = vector.broadcast %cst_15 : f32 to vector<1x2xf32>
    %21 = arith.addf %19, %20 : vector<1x2xf32>
    %22 = math.rsqrt %21 : vector<1x2xf32>
    %cst_16 = arith.constant dense<0.000000e+00> : vector<1x32xf32>
    %23 = tpu.matmul %22, %2, %cst_16 {dimension_numbers = #tpu.dot_dimension_numbers<[1], [0], [0], [1], [0, 0, 1, 1], [], []>, precision = #tpu.contract_precision<fp32>} : vector<1x2xf32>, vector<2x32xf32>, vector<1x32xf32> -> vector<1x32xf32>
    %24 = vector.broadcast %23 : vector<1x32xf32> to vector<16x32xf32>
    %25 = arith.mulf %13, %24 : vector<16x32xf32>
    %c0_17 = arith.constant 0 : index
    %c0_18 = arith.constant 0 : index
    %c0_19 = arith.constant 0 : index
    %26 = vector.load %arg3[%c0_17, %c0_18, %c0_19] : memref<2x16x32xf32, #tpu.memory_space<vmem>>, vector<1x16x32xf32>
    %27 = vector.shape_cast %26 : vector<1x16x32xf32> to vector<16x32xf32>
    %28 = arith.mulf %25, %27 : vector<16x32xf32>
    %c0_20 = arith.constant 0 : index
    %c0_21 = arith.constant 0 : index
    %c0_22 = arith.constant 0 : index
    %29 = vector.load %arg4[%c0_20, %c0_21, %c0_22] : memref<2x16x32xf32, #tpu.memory_space<vmem>>, vector<1x16x32xf32>
    %30 = vector.shape_cast %29 : vector<1x16x32xf32> to vector<16x32xf32>
    %31 = arith.addf %28, %30 : vector<16x32xf32>
    %c1 = arith.constant 1 : index
    %c0_23 = arith.constant 0 : index
    %c0_24 = arith.constant 0 : index
    %32 = vector.load %arg2[%c1, %c0_23, %c0_24] : memref<2x16x16xf32, #tpu.memory_space<vmem>>, vector<1x16x16xf32>
    %33 = vector.shape_cast %32 : vector<1x16x16xf32> to vector<16x16xf32>
    %cst_25 = arith.constant dense<0.000000e+00> : vector<16x32xf32>
    %34 = tpu.matmul %33, %31, %cst_25 {dimension_numbers = #tpu.dot_dimension_numbers<[1], [0], [0], [1], [0, 0, 1, 1], [], []>, precision = #tpu.contract_precision<fp32>} : vector<16x16xf32>, vector<16x32xf32>, vector<16x32xf32> -> vector<16x32xf32>
    %cst_26 = arith.constant dense<0.000000e+00> : vector<32xf32>
    %35 = vector.multi_reduction <add>, %34, %cst_26 [0] : vector<16x32xf32> to vector<32xf32>
    %36 = vector.shape_cast %35 : vector<32xf32> to vector<1x32xf32>
    %cst_27 = arith.constant dense<0.000000e+00> : vector<1x2xf32>
    %37 = tpu.matmul %36, %1, %cst_27 {dimension_numbers = #tpu.dot_dimension_numbers<[1], [0], [0], [1], [0, 0, 1, 1], [], []>, precision = #tpu.contract_precision<fp32>} : vector<1x32xf32>, vector<32x2xf32>, vector<1x2xf32> -> vector<1x2xf32>
    %cst_28 = arith.constant 3.906250e-03 : f32
    %38 = vector.broadcast %cst_28 : f32 to vector<1x2xf32>
    %39 = arith.mulf %37, %38 : vector<1x2xf32>
    %cst_29 = arith.constant dense<0.000000e+00> : vector<1x32xf32>
    %40 = tpu.matmul %39, %2, %cst_29 {dimension_numbers = #tpu.dot_dimension_numbers<[1], [0], [0], [1], [0, 0, 1, 1], [], []>, precision = #tpu.contract_precision<fp32>} : vector<1x2xf32>, vector<2x32xf32>, vector<1x32xf32> -> vector<1x32xf32>
    %41 = vector.broadcast %40 : vector<1x32xf32> to vector<16x32xf32>
    %42 = arith.subf %34, %41 : vector<16x32xf32>
    %43 = arith.mulf %42, %42 : vector<16x32xf32>
    %cst_30 = arith.constant dense<0.000000e+00> : vector<32xf32>
    %44 = vector.multi_reduction <add>, %43, %cst_30 [0] : vector<16x32xf32> to vector<32xf32>
    %45 = vector.shape_cast %44 : vector<32xf32> to vector<1x32xf32>
    %cst_31 = arith.constant dense<0.000000e+00> : vector<1x2xf32>
    %46 = tpu.matmul %45, %1, %cst_31 {dimension_numbers = #tpu.dot_dimension_numbers<[1], [0], [0], [1], [0, 0, 1, 1], [], []>, precision = #tpu.contract_precision<fp32>} : vector<1x32xf32>, vector<32x2xf32>, vector<1x2xf32> -> vector<1x2xf32>
    %cst_32 = arith.constant 3.906250e-03 : f32
    %47 = vector.broadcast %cst_32 : f32 to vector<1x2xf32>
    %48 = arith.mulf %46, %47 : vector<1x2xf32>
    %cst_33 = arith.constant 9.99999974E-6 : f32
    %49 = vector.broadcast %cst_33 : f32 to vector<1x2xf32>
    %50 = arith.addf %48, %49 : vector<1x2xf32>
    %51 = math.rsqrt %50 : vector<1x2xf32>
    %cst_34 = arith.constant dense<0.000000e+00> : vector<1x32xf32>
    %52 = tpu.matmul %51, %2, %cst_34 {dimension_numbers = #tpu.dot_dimension_numbers<[1], [0], [0], [1], [0, 0, 1, 1], [], []>, precision = #tpu.contract_precision<fp32>} : vector<1x2xf32>, vector<2x32xf32>, vector<1x32xf32> -> vector<1x32xf32>
    %53 = vector.broadcast %52 : vector<1x32xf32> to vector<16x32xf32>
    %54 = arith.mulf %42, %53 : vector<16x32xf32>
    %c1_35 = arith.constant 1 : index
    %c0_36 = arith.constant 0 : index
    %c0_37 = arith.constant 0 : index
    %55 = vector.load %arg3[%c1_35, %c0_36, %c0_37] : memref<2x16x32xf32, #tpu.memory_space<vmem>>, vector<1x16x32xf32>
    %56 = vector.shape_cast %55 : vector<1x16x32xf32> to vector<16x32xf32>
    %57 = arith.mulf %54, %56 : vector<16x32xf32>
    %c1_38 = arith.constant 1 : index
    %c0_39 = arith.constant 0 : index
    %c0_40 = arith.constant 0 : index
    %58 = vector.load %arg4[%c1_38, %c0_39, %c0_40] : memref<2x16x32xf32, #tpu.memory_space<vmem>>, vector<1x16x32xf32>
    %59 = vector.shape_cast %58 : vector<1x16x32xf32> to vector<16x32xf32>
    %60 = arith.addf %57, %59 : vector<16x32xf32>
    %c0_41 = arith.constant 0 : index
    %c0_42 = arith.constant 0 : index
    %61 = vector.load %arg5[%c0_41, %c0_42] : memref<10x16xf32, #tpu.memory_space<vmem>>, vector<10x16xf32>
    %cst_43 = arith.constant dense<0.000000e+00> : vector<10x32xf32>
    %62 = tpu.matmul %61, %60, %cst_43 {dimension_numbers = #tpu.dot_dimension_numbers<[1], [0], [0], [1], [0, 0, 1, 1], [], []>, precision = #tpu.contract_precision<fp32>} : vector<10x16xf32>, vector<16x32xf32>, vector<10x32xf32> -> vector<10x32xf32>
    %63 = arith.mulf %62, %62 : vector<10x32xf32>
    %cst_44 = arith.constant dense<0.000000e+00> : vector<10x2xf32>
    %64 = tpu.matmul %63, %1, %cst_44 {dimension_numbers = #tpu.dot_dimension_numbers<[1], [0], [0], [1], [0, 0, 1, 1], [], []>, precision = #tpu.contract_precision<fp32>} : vector<10x32xf32>, vector<32x2xf32>, vector<10x2xf32> -> vector<10x2xf32>
    %65 = math.sqrt %64 : vector<10x2xf32>
    %c0_45 = arith.constant 0 : index
    %c0_46 = arith.constant 0 : index
    %66 = vector.load %arg6[%c0_45, %c0_46] : memref<10x1xf32, #tpu.memory_space<vmem>>, vector<10x1xf32>
    %67 = vector.broadcast %66 : vector<10x1xf32> to vector<10x2xf32>
    %68 = arith.addf %65, %67 : vector<10x2xf32>
    %c0_47 = arith.constant 0 : index
    %c0_48 = arith.constant 0 : index
    %c0_49 = arith.constant 0 : index
    %69 = vector.load %arg9[%c0_47, %c0_48, %c0_49] : memref<1x10x2xf32, #tpu.memory_space<vmem>>, vector<1x10x2xf32>
    %70 = vector.shape_cast %69 : vector<1x10x2xf32> to vector<10x2xf32>
    %71 = vector.shape_cast %68 : vector<10x2xf32> to vector<1x10x2xf32>
    tpu.vector_store %arg9[%c0_47, %c0_48, %c0_49], %71 {strides = array<i32>} : memref<1x10x2xf32, #tpu.memory_space<vmem>>, vector<1x10x2xf32>,
    return
  }
  func.func @transform_0(%arg0: i32) -> (i32, i32) {
    %c0_i32 = arith.constant 0 : i32
    %c0_i32_0 = arith.constant 0 : i32
    return %c0_i32, %arg0 : i32, i32
  }
  func.func @transform_1(%arg0: i32) -> (i32, i32, i32) {
    %c0_i32 = arith.constant 0 : i32
    %c0_i32_0 = arith.constant 0 : i32
    %c0_i32_1 = arith.constant 0 : i32
    %c0_i32_2 = arith.constant 0 : i32
    return %c0_i32, %c0_i32_0, %c0_i32_1 : i32, i32, i32
  }
  func.func @transform_2(%arg0: i32) -> (i32, i32, i32) {
    %c0_i32 = arith.constant 0 : i32
    %c0_i32_0 = arith.constant 0 : i32
    %c0_i32_1 = arith.constant 0 : i32
    %c0_i32_2 = arith.constant 0 : i32
    return %c0_i32, %c0_i32_0, %c0_i32_1 : i32, i32, i32
  }
  func.func @transform_3(%arg0: i32) -> (i32, i32, i32) {
    %c0_i32 = arith.constant 0 : i32
    %c0_i32_0 = arith.constant 0 : i32
    %c0_i32_1 = arith.constant 0 : i32
    %c0_i32_2 = arith.constant 0 : i32
    return %c0_i32, %c0_i32_0, %c0_i32_1 : i32, i32, i32
  }
  func.func @transform_4(%arg0: i32) -> (i32, i32) {
    %c0_i32 = arith.constant 0 : i32
    %c0_i32_0 = arith.constant 0 : i32
    %c0_i32_1 = arith.constant 0 : i32
    return %c0_i32, %c0_i32_0 : i32, i32
  }
  func.func @transform_5(%arg0: i32) -> (i32, i32) {
    %c0_i32 = arith.constant 0 : i32
    %c0_i32_0 = arith.constant 0 : i32
    %c0_i32_1 = arith.constant 0 : i32
    return %c0_i32, %c0_i32_0 : i32, i32
  }
  func.func @transform_6(%arg0: i32) -> (i32, i32) {
    %c0_i32 = arith.constant 0 : i32
    %c0_i32_0 = arith.constant 0 : i32
    %c0_i32_1 = arith.constant 0 : i32
    return %c0_i32, %c0_i32_0 : i32, i32
  }
  func.func @transform_7(%arg0: i32) -> (i32, i32) {
    %c0_i32 = arith.constant 0 : i32
    %c0_i32_0 = arith.constant 0 : i32
    %c0_i32_1 = arith.constant 0 : i32
    return %c0_i32, %c0_i32_0 : i32, i32
  }
  func.func @transform_8(%arg0: i32) -> (i32, i32, i32) {
    %c0_i32 = arith.constant 0 : i32
    %c0_i32_0 = arith.constant 0 : i32
    %c0_i32_1 = arith.constant 0 : i32
    return %arg0, %c0_i32, %c0_i32_0 : i32, i32, i32
  }
}

</mosaic_0001>

<bundles_post_ra>
// kernel: routing_matrix_forward.1
= control target key start
LH: loop header
LB: loop body
LE: loop exit
PB: predicated region body
PF: predicated region fallthrough
CT: control target
= control target key end

     0   :  { %vm38_vm0 = vcmask 130048   ;;  %v7236_v53 = vmov 0.0|0.0   ;;  %vm7237_vm1 = vmmov 0   ;;  %v7238_v58 = vmov 0.0   ;;  %s7725_s0 = inlined_call_operand.vmem [shape: f32[16,32], index: 0, kind: input, shape index: {}]   ;;  %s7726_s1 = inlined_call_operand.vmem [shape: f32[2,16,16], index: 1, kind: input, shape index: {}]   ;;  %s7727_s6 = inlined_call_operand.vmem [shape: f32[32,2], index: 6, kind: input, shape index: {}]   ;;  %s7728_s7 = inlined_call_operand.vmem [shape: f32[2,32], index: 7, kind: input, shape index: {}]   ;;  %s7729_s2 = inlined_call_operand.vmem [shape: f32[2,16,32], index: 2, kind: input, shape index: {}]   ;;  %s7730_s3 = inlined_call_operand.vmem [shape: f32[2,16,32], index: 3, kind: input, shape index: {}]   ;;  %s7731_s4 = inlined_call_operand.vmem [shape: f32[10,16], index: 4, kind: input, shape index: {}]   ;;  %s7732_s5 = inlined_call_operand.vmem [shape: f32[10,1], index: 5, kind: input, shape index: {}]   ;;  %s7733_s8 = inlined_call_operand.vmem [shape: f32[1,10,2], index: 8, kind: output, shape index: {}]  }
   0x1   :  { %v29_v0 = vld [vmem:[%s7725_s0] sm:$0xff]  ;;  %v30_v1 = vld [vmem:[%s7725_s0 + $0x8] sm:$0xff]  ;;  %v33_v36 = vld [vmem:[%s7727_s6 + $0x10] sm:$0xff]  ;;  %6871 = vmatprep.subr.bf16.mxu1 %v7236_v53  ;;  %6326 = vmatprep.mubr.msk.f32.mxu1 %vm7237_vm1, %v7238_v58  ;;  %vm547_vm2 = vcmask 261120   ;;  %vm1050_vm3 = vcmask 1041408   ;;  %vm1046_vm4 = vcmask 15360  }
   0x2   :  { %v36_v2 = vld [vmem:[%s7726_s1] sm:$0xff]  ;;  %v46_v3 = vand.u32 4294901760, %v29_v0  ;;  %v49_v4 = vand.u32 4294901760, %v30_v1  ;;  %v37_v6 = vld [vmem:[%s7726_s1 + $0x8] sm:$0xff]  ;;  %v34_v37 = vld [vmem:[%s7727_s6 + $0x18] sm:$0xff]  ;;  %v567_v40 = vand.u32 4294901760, %v33_v36 }
   0x3   :  { %v40_v5 = vsel %vm38_vm0, %v36_v2, 0  ;;  %v43_v8 = vsel %vm38_vm0, %v37_v6, 0  ;;  %v31_v30 = vld [vmem:[%s7727_s6] sm:$0xff]  ;;  %v32_v31 = vld [vmem:[%s7727_s6 + $0x8] sm:$0xff]  ;;  %v570_v41 = vand.u32 4294901760, %v34_v37  ;;  %vm5977_vm9 = vcmask 9216  }
   0x4   :  { %v112_v7 = vand.u32 4294901760, %v40_v5  ;;  %v6841_v9 = vpack.c.bf16 %v49_v4, %v46_v3  ;;  %v122_v10 = vand.u32 4294901760, %v43_v8  ;;  %v134_v11 = vsub.f32 %v29_v0, %v46_v3 }
   0x5   :  { %v141_v12 = vsub.f32 %v30_v1, %v49_v4  ;;  %v561_v32 = vand.u32 4294901760, %v31_v30  ;;  %v564_v33 = vand.u32 4294901760, %v32_v31  ;;  %v655_v44 = vsub.f32 %v33_v36, %v567_v40 }
   0x6   :  { %v113_v13 = vsub.f32 %v40_v5, %v112_v7  ;;  %6842 = vmatprep.subr.bf16.mxu0 %v6841_v9  ;;  %v123_v14 = vsub.f32 %v43_v8, %v122_v10  ;;  %v135_v15 = vand.u32 4294901760, %v134_v11  ;;  %v662_v45 = vsub.f32 %v34_v37, %v570_v41 }
   0x7   :  { %v142_v16 = vand.u32 4294901760, %v141_v12  ;;  %6844 = vmatpush3.bf16.msra.mxu0 %v6841_v9  ;;  %v6849_v28 = vpack.c.bf16 %v141_v12, %v134_v11  ;;  %v641_v34 = vsub.f32 %v31_v30, %v561_v32  ;;  %v648_v35 = vsub.f32 %v32_v31, %v564_v33 }
   0x8   :  { %v114_v17 = vand.u32 4294901760, %v113_v13  ;;  %v124_v18 = vand.u32 4294901760, %v123_v14  ;;  %v136_v19 = vsub.f32 %v134_v11, %v135_v15  ;;  %v656_v48 = vand.u32 4294901760, %v655_v44 }
   0x9   :  { %v143_v20 = vsub.f32 %v141_v12, %v142_v16  ;;  %v6857_v29 = vpack.c.bf16 %v142_v16, %v135_v15  ;;  %v642_v38 = vand.u32 4294901760, %v641_v34  ;;  %v649_v39 = vand.u32 4294901760, %v648_v35 }
   0xa   :  { %v115_v21 = vsub.f32 %v113_v13, %v114_v17  ;;  %v125_v22 = vsub.f32 %v123_v14, %v124_v18  ;;  %v137_v23 = vand.u32 4294901760, %v136_v19  ;;  %v663_v49 = vand.u32 4294901760, %v662_v45 }
   0xb   :  { %v144_v24 = vand.u32 4294901760, %v143_v20  ;;  %v643_v42 = vsub.f32 %v641_v34, %v642_v38  ;;  %v650_v43 = vsub.f32 %v648_v35, %v649_v39  ;;  %v657_v51 = vsub.f32 %v655_v44, %v656_v48 }
   0xc   :  { %v116_v25 = vand.u32 4294901760, %v115_v21  ;;  %v126_v26 = vand.u32 4294901760, %v125_v22  ;;  %v664_v52 = vsub.f32 %v662_v45, %v663_v49  ;;  %v7317_v56 = vpack.c.bf16 %v564_v33, %v561_v32 }
   0xd   :  { %v6845_v27 = vpack.c.bf16 %v144_v24, %v137_v23  ;;  %v644_v46 = vand.u32 4294901760, %v643_v42  ;;  %v651_v47 = vand.u32 4294901760, %v650_v43  ;;  %v658_v54 = vand.u32 4294901760, %v657_v51 }
   0xe   :  { %6269 = vmatprep.mubr.f32.mxu0 %v116_v25  ;;  %v665_v55 = vand.u32 4294901760, %v664_v52  ;;  %v7324_v59 = vpack.c.bf16 %v570_v41, %v567_v40  ;;  %v7328_v60 = vpack.c.bf16 %v648_v35, %v641_v34  ;;  %v7334_v61 = vpack.c.bf16 %v662_v45, %v655_v44 }
   0xf   :  { %6270 = vmatmul.mubr.f32.vlgmr.msra.gmra.mrb[0].mxu0 %v126_v26  ;;  %6846 = vmatprep.subr.bf16.mxu0 %v6845_v27  ;;  %v7311_v50 = vpack.c.bf16 %v651_v47, %v644_v46  ;;  %v7337_v62 = vpack.c.bf16 %v649_v39, %v642_v38  ;;  %v7339_v63 = vpack.c.bf16 %v663_v49, %v656_v48  ;;  %v1500_v36 = vlaneseq }
  0x10   :  { %6848 = vmatpush3.bf16.msra.mxu0 %v6845_v27  ;;  %6276 = vmatprep.mubr.f32.mxu0 %v112_v7  ;;  %v7319_v57 = vpack.c.bf16 %v665_v55, %v658_v54 }
  0x11   :  { %6850 = vmatprep.subr.bf16.mxu0 %v6849_v28  ;;  %6873 = vmatpush3.bf16.msra.mxu1 %v7311_v50  ;;  %v1501_v37 = vshrl.u32 %v1500_v36, 7 }
  0x12   :  { %6874 = vmatprep.subr.bf16.mxu1 %v7236_v53 }
  0x13   :  { %v7424_v38 = vsub.s32 0, %v1501_v37 }
  0x15   :  { %6876 = vmatpush3.bf16.msra.mxu1 %v7319_v57 }
  0x16   :  { %6877 = vmatprep.subr.bf16.mxu1 %v7236_v53 }
  0x17   :  { %6277 = vmatmul.mubr.f32.vlgmr.msra.gmra.mrb[0].mxu0 %v122_v10 }
  0x18   :  { %6852 = vmatpush3.bf16.msra.mxu0 %v6849_v28  ;;  %6283 = vmatprep.mubr.f32.mxu0 %v113_v13 }
  0x19   :  { %6854 = vmatprep.subr.bf16.mxu0 %v6841_v9 }
  0x1f   :  { %6284 = vmatmul.mubr.f32.vlgmr.msra.gmra.mrb[0].mxu0 %v123_v14 }
  0x20   :  { %6856 = vmatpush3.bf16.msra.mxu0 %v6841_v9  ;;  %6290 = vmatprep.mubr.f32.mxu0 %v114_v17  ;;  %v35_v17 = vld [vmem:[%s7728_s7] sm:$0x3] }
  0x21   :  { %6858 = vmatprep.subr.bf16.mxu0 %v6857_v29 }
  0x27   :  { %6291 = vmatmul.mubr.f32.vlgmr.msra.gmra.mrb[0].mxu0 %v124_v18  ;;  %v1052_v18 = vsel %vm1050_vm3, %v35_v17, 0 }
  0x28   :  { %6860 = vmatpush3.bf16.msra.mxu0 %v6857_v29  ;;  %6297 = vmatprep.mubr.f32.mxu0 %v112_v7  ;;  %v7381_v19 = vand.u32 4294901760, %v1052_v18 }
  0x29   :  { %6862 = vmatprep.subr.bf16.mxu0 %v6841_v9 }
  0x2a   :  { %v7385_v20 = vsub.f32 %v1052_v18, %v7381_v19  ;;  %v5983_v18 = vld [vmem:[%s7726_s1 + $0x10] sm:$0xff] }
  0x2c   :  { %v7389_v21 = vand.u32 4294901760, %v7385_v20 }
  0x2e   :  { %v1134_v22 = vsub.f32 %v7385_v20, %v7389_v21 }
  0x2f   :  { %6298 = vmatmul.mubr.f32.vlgmr.msra.gmra.mrb[0].mxu0 %v122_v10 }
  0x30   :  { %6864 = vmatpush3.bf16.msra.mxu0 %v6841_v9  ;;  %6304 = vmatprep.mubr.f32.mxu0 %v112_v7  ;;  %v7393_v23 = vand.u32 4294901760, %v1134_v22  ;;  %v2475_v22 = vsel %vm38_vm0, %v5983_v18, 0 }
  0x31   :  { %6865 = vmatprep.subr.bf16.mxu0 %v7236_v53 }
  0x37   :  { %6305 = vmatmul.mubr.f32.vlgmr.msra.gmra.mrb[0].mxu0 %v122_v10 }
  0x38   :  { %6867 = vmatpush3.bf16.msra.mxu0 %v7317_v56  ;;  %6315 = vmatprep.mubr.msk.f32.mxu0 %vm7237_vm1, %v7238_v58 }
  0x39   :  { %6868 = vmatprep.subr.bf16.mxu0 %v7236_v53 }
  0x3c   :  { %6870 = vmatpush3.bf16.msra.mxu0 %v7324_v59 }
  0x3d   :  { %6373 = vmatprep.subr.mxu0 %v7238_v58 }
 0x10a   :  { %v7341_v0 = vpop.f32.mrb[0].mxu0 }
 0x10b   :  { %v549_v1 = vsel %vm547_vm2, %v7341_v0, 0.0  ;;  %v7345_v2 = vpop.f32.mrb[1].mxu0 }
 0x10c   :  { %v548_v3 = vsel %vm547_vm2, %v7345_v2, 0.0 }
 0x10d   :  { %v550_v4 = vadd.f32 %v549_v1, %v548_v3 }
 0x10f   :  { %v551_v5 = vrot.slane %v550_v4, 4 }
 0x111   :  { %v552_v6 = vadd.f32 %v551_v5, %v550_v4 }
 0x113   :  { %v553_v7 = vrot.slane %v552_v6, 2 }
 0x115   :  { %v554_v8 = vadd.f32 %v553_v7, %v552_v6 }
 0x117   :  { %v555_v9 = vrot.slane %v554_v8, 1 }
 0x119   :  { %v556_v10 = vadd.f32 %v555_v9, %v554_v8 }
 0x11b   :  { %v558_v11 = vsel %vm547_vm2, %v556_v10, 0 }
 0x11c   :  { %v629_v12 = vand.u32 4294901760, %v558_v11 }
 0x11e   :  { %v630_v13 = vsub.f32 %v558_v11, %v629_v12  ;;  %6327 = vmatmul.mubr.f32.vlgmr.msra.gmra.mrb[0].mxu1 %v629_v12 }
 0x11f   :  { %6879 = vmatpush3.bf16.msra.mxu1 %v7328_v60  ;;  %6337 = vmatprep.mubr.msk.f32.mxu1 %vm7237_vm1, %v7238_v58 }
 0x120   :  { %6880 = vmatprep.subr.bf16.mxu1 %v7236_v53  ;;  %v631_v14 = vand.u32 4294901760, %v630_v13 }
 0x122   :  { %v632_v15 = vsub.f32 %v630_v13, %v631_v14 }
 0x123   :  { %6882 = vmatpush3.bf16.msra.mxu1 %v7334_v61 }
 0x124   :  { %v633_v16 = vand.u32 4294901760, %v632_v15  ;;  %6883 = vmatprep.subr.bf16.mxu1 %v7236_v53 }
 0x126   :  { %6316 = vmatmul.mubr.f32.vlgmr.msra.gmra.mrb[2].mxu0 %v633_v16  ;;  %6338 = vmatmul.mubr.f32.vlgmr.msra.gmra.mrb[0].mxu1 %v630_v13 }
 0x127   :  { %6885 = vmatpush3.bf16.msra.mxu1 %v7317_v56  ;;  %6348 = vmatprep.mubr.msk.f32.mxu1 %vm7237_vm1, %v7238_v58 }
 0x128   :  { %6886 = vmatprep.subr.bf16.mxu1 %v7236_v53  ;;  %6375 = vmatprep.mubr.msk.f32.mxu0 %vm7237_vm1, %v7238_v58 }
 0x129   :  { %6374 = vmatpush3.msra.mxu0 %v7381_v19 }
 0x12a   :  { %6378 = vmatprep.subr.mxu0 %v7238_v58 }
 0x12b   :  { %6888 = vmatpush3.bf16.msra.mxu1 %v7324_v59 }
 0x12c   :  { %6889 = vmatprep.subr.bf16.mxu1 %v7236_v53 }
 0x12e   :  { %6349 = vmatmul.mubr.f32.vlgmr.msra.gmra.mrb[0].mxu1 %v631_v14 }
 0x12f   :  { %6891 = vmatpush3.bf16.msra.mxu1 %v7337_v62  ;;  %6359 = vmatprep.mubr.msk.f32.mxu1 %vm7237_vm1, %v7238_v58 }
 0x130   :  { %6892 = vmatprep.subr.bf16.mxu1 %v7236_v53 }
 0x133   :  { %6894 = vmatpush3.bf16.msra.mxu1 %v7339_v63 }
 0x134   :  { %6895 = vmatprep.subr.bf16.mxu1 %v7236_v53 }
 0x136   :  { %6360 = vmatmul.mubr.f32.vlgmr.msra.gmra.mrb[0].mxu1 %v629_v12 }
 0x137   :  { %6897 = vmatpush3.bf16.msra.mxu1 %v7317_v56  ;;  %6370 = vmatprep.mubr.msk.f32.mxu1 %vm7237_vm1, %v7238_v58 }
 0x138   :  { %6898 = vmatprep.subr.bf16.mxu1 %v7236_v53 }
 0x13b   :  { %6900 = vmatpush3.bf16.msra.mxu1 %v7324_v59 }
 0x13c   :  { %6474 = vmatprep.subr.mxu1 %v7238_v58 }
 0x13e   :  { %6371 = vmatmul.mubr.f32.vlgmr.msra.gmra.mrb[0].mxu1 %v629_v12 }
 0x13f   :  { %6476 = vmatprep.mubr.msk.f32.mxu1 %vm7237_vm1, %v7238_v58  ;;  %6475 = vmatpush3.msra.mxu1 %v7393_v23 }
 0x140   :  { %6479 = vmatprep.subr.mxu1 %v7238_v58 }
 0x1f9   :  { %v635_v24 = vpop.f32.mrb[2].mxu0 }
 0x1fa   :  { %v6317_v25 = vpop.f32.mrb[3].mxu0 }
 0x211   :  { %v1041_v26 = vpop.f32.mrb[0].mxu1 }
 0x212   :  { %v7105_v27 = vadd.f32 %v1041_v26, %v635_v24  ;;  %v6372_v28 = vpop.f32.mrb[1].mxu1  ;;  %v7500_v24 = vand.u32 4294901760, %v2475_v22 }
 0x214   :  { %v1045_v29 = vmul.f32 0.00390625, %v7105_v27  ;;  %v2548_v25 = vsub.f32 %v2475_v22, %v7500_v24 }
 0x216   :  { %v1048_v30 = vsel %vm1046_vm4, %v1045_v29, 0  ;;  %v2549_v26 = vand.u32 4294901760, %v2548_v25 }
 0x217   :  { %v1120_v31 = vand.u32 4294901760, %v1048_v30 }
 0x218   :  { %v2550_v27 = vsub.f32 %v2548_v25, %v2549_v26 }
 0x219   :  { %v1121_v32 = vsub.f32 %v1048_v30, %v1120_v31 }
 0x21a   :  { %v2551_v28 = vand.u32 4294901760, %v2550_v27 }
 0x21b   :  { %v1122_v33 = vand.u32 4294901760, %v1121_v32 }
 0x21d   :  { %v1123_v34 = vsub.f32 %v1121_v32, %v1122_v33 }
 0x21f   :  { %v1124_v35 = vand.u32 4294901760, %v1123_v34 }
 0x221   :  { %6376 = vmatmul.mubr.f32.vlgmr.msra.gmra.mrb[4].mxu0 %v1124_v35 }
 0x222   :  { %6379 = vmatpush3.msra.mxu0 %v7393_v23  ;;  %6380 = vmatprep.mubr.msk.f32.mxu0 %vm7237_vm1, %v7238_v58 }
 0x223   :  { %6383 = vmatprep.subr.mxu0 %v7238_v58 }
 0x229   :  { %6381 = vmatmul.mubr.f32.vlgmr.msra.gmra.mrb[4].mxu0 %v1120_v31 }
 0x22a   :  { %6384 = vmatpush3.msra.mxu0 %v7385_v20  ;;  %6385 = vmatprep.mubr.msk.f32.mxu0 %vm7237_vm1, %v7238_v58 }
 0x22b   :  { %6388 = vmatprep.subr.mxu0 %v7238_v58 }
 0x231   :  { %6386 = vmatmul.mubr.f32.vlgmr.msra.gmra.mrb[4].mxu0 %v1121_v32 }
 0x232   :  { %6389 = vmatpush3.msra.mxu0 %v7381_v19  ;;  %6390 = vmatprep.mubr.msk.f32.mxu0 %vm7237_vm1, %v7238_v58 }
 0x233   :  { %6393 = vmatprep.subr.mxu0 %v7238_v58 }
 0x239   :  { %6391 = vmatmul.mubr.f32.vlgmr.msra.gmra.mrb[4].mxu0 %v1122_v33 }
 0x23a   :  { %6394 = vmatpush3.msra.mxu0 %v7389_v21  ;;  %6395 = vmatprep.mubr.msk.f32.mxu0 %vm7237_vm1, %v7238_v58 }
 0x23b   :  { %6398 = vmatprep.subr.mxu0 %v7238_v58 }
 0x241   :  { %6396 = vmatmul.mubr.f32.vlgmr.msra.gmra.mrb[4].mxu0 %v1120_v31 }
 0x242   :  { %6399 = vmatpush3.msra.mxu0 %v7381_v19  ;;  %6400 = vmatprep.mubr.msk.f32.mxu0 %vm7237_vm1, %v7238_v58 }
 0x243   :  { %6901 = vmatprep.subr.bf16.mxu0 %v7236_v53 }
 0x249   :  { %6401 = vmatmul.mubr.f32.vlgmr.msra.gmra.mrb[4].mxu0 %v1120_v31  ;;  %v5984_v31 = vld [vmem:[%s7726_s1 + $0x18] sm:$0xff] }
 0x24a   :  { %6903 = vmatpush3.bf16.msra.mxu0 %v7317_v56  ;;  %6411 = vmatprep.mubr.msk.f32.mxu0 %vm7237_vm1, %v7238_v58  ;;  %v2478_v32 = vsel %vm38_vm0, %v5984_v31, 0 }
 0x24b   :  { %6904 = vmatprep.subr.bf16.mxu0 %v7236_v53  ;;  %v2557_v33 = vand.u32 4294901760, %v2478_v32 }
 0x24e   :  { %6906 = vmatpush3.bf16.msra.mxu0 %v7324_v59 }
 0x24f   :  { %6907 = vmatprep.subr.bf16.mxu0 %v7236_v53 }
 0x31c   :  { %v1496_v39 = vpop.f32.mrb[4].mxu0 }
 0x31d   :  { %v1503_v40 = vrot.slane %v1496_v39, %v7424_v38  ;;  %v6402_v41 = vpop.f32.mrb[5].mxu0  ;;  %v2558_v39 = vsub.f32 %v2478_v32, %v2557_v33 }
 0x31e   :  { %v2464_v41 = vld [vmem:[%s7729_s2 + $0x8] sm:$0xff] }
 0x31f   :  { %v7428_v42 = vsub.f32 %v7345_v2, %v1503_v40  ;;  %v7431_v43 = vsub.f32 %v7341_v0, %v1503_v40  ;;  %v2463_v40 = vld [vmem:[%s7729_s2] sm:$0xff] }
 0x321   :  { %v1506_v44 = vmul.f32 %v7428_v42, %v7428_v42  ;;  %v1507_v45 = vmul.f32 %v7431_v43, %v7431_v43 }
 0x323   :  { %v1508_v46 = vsel %vm547_vm2, %v1506_v44, 0.0  ;;  %v1509_v47 = vsel %vm547_vm2, %v1507_v45, 0.0 }
 0x324   :  { %v1510_v48 = vadd.f32 %v1509_v47, %v1508_v46  ;;  %v2467_v46 = vld [vmem:[%s7730_s3] sm:$0xff]  ;;  %v2468_v47 = vld [vmem:[%s7730_s3 + $0x8] sm:$0xff] }
 0x326   :  { %v1511_v49 = vrot.slane %v1510_v48, 4 }
 0x328   :  { %v1512_v51 = vadd.f32 %v1511_v49, %v1510_v48 }
 0x32a   :  { %v1513_v52 = vrot.slane %v1512_v51, 2 }
 0x32c   :  { %v1514_v54 = vadd.f32 %v1513_v52, %v1512_v51  ;;  %v2559_v51 = vand.u32 4294901760, %v2558_v39 }
 0x32e   :  { %v1515_v55 = vrot.slane %v1514_v54, 1 }
 0x330   :  { %v1516_v1 = vadd.f32 %v1515_v55, %v1514_v54 }
 0x332   :  { %v1518_v0 = vsel %vm547_vm2, %v1516_v1, 0 }
 0x333   :  { %v1589_v2 = vand.u32 4294901760, %v1518_v0 }
 0x335   :  { %v1590_v3 = vsub.f32 %v1518_v0, %v1589_v2  ;;  %v2560_v0 = vsub.f32 %v2558_v39, %v2559_v51 }
 0x337   :  { %v1591_v4 = vand.u32 4294901760, %v1590_v3 }
 0x339   :  { %v1592_v5 = vsub.f32 %v1590_v3, %v1591_v4 }
 0x33b   :  { %v1593_v6 = vand.u32 4294901760, %v1592_v5 }
 0x33d   :  { %6412 = vmatmul.mubr.f32.vlgmr.msra.gmra.mrb[6].mxu0 %v1593_v6 }
 0x33e   :  { %6909 = vmatpush3.bf16.msra.mxu0 %v7311_v50  ;;  %6422 = vmatprep.mubr.msk.f32.mxu0 %vm7237_vm1, %v7238_v58 }
 0x33f   :  { %6910 = vmatprep.subr.bf16.mxu0 %v7236_v53 }
 0x342   :  { %6912 = vmatpush3.bf16.msra.mxu0 %v7319_v57 }
 0x343   :  { %6913 = vmatprep.subr.bf16.mxu0 %v7236_v53 }
 0x345   :  { %6423 = vmatmul.mubr.f32.vlgmr.msra.gmra.mrb[6].mxu0 %v1589_v2 }
 0x346   :  { %6915 = vmatpush3.bf16.msra.mxu0 %v7328_v60  ;;  %6433 = vmatprep.mubr.msk.f32.mxu0 %vm7237_vm1, %v7238_v58 }
 0x347   :  { %6916 = vmatprep.subr.bf16.mxu0 %v7236_v53 }
 0x34a   :  { %6918 = vmatpush3.bf16.msra.mxu0 %v7334_v61 }
 0x34b   :  { %6919 = vmatprep.subr.bf16.mxu0 %v7236_v53 }
 0x34d   :  { %6434 = vmatmul.mubr.f32.vlgmr.msra.gmra.mrb[6].mxu0 %v1590_v3 }
 0x34e   :  { %6921 = vmatpush3.bf16.msra.mxu0 %v7317_v56  ;;  %6444 = vmatprep.mubr.msk.f32.mxu0 %vm7237_vm1, %v7238_v58 }
 0x34f   :  { %6922 = vmatprep.subr.bf16.mxu0 %v7236_v53 }
 0x352   :  { %6924 = vmatpush3.bf16.msra.mxu0 %v7324_v59 }
 0x353   :  { %6925 = vmatprep.subr.bf16.mxu0 %v7236_v53 }
 0x355   :  { %6445 = vmatmul.mubr.f32.vlgmr.msra.gmra.mrb[6].mxu0 %v1591_v4 }
 0x356   :  { %6927 = vmatpush3.bf16.msra.mxu0 %v7337_v62  ;;  %6455 = vmatprep.mubr.msk.f32.mxu0 %vm7237_vm1, %v7238_v58 }
 0x357   :  { %6928 = vmatprep.subr.bf16.mxu0 %v7236_v53 }
 0x35a   :  { %6930 = vmatpush3.bf16.msra.mxu0 %v7339_v63 }
 0x35b   :  { %6931 = vmatprep.subr.bf16.mxu0 %v7236_v53 }
 0x35d   :  { %6456 = vmatmul.mubr.f32.vlgmr.msra.gmra.mrb[6].mxu0 %v1589_v2 }
 0x35e   :  { %6933 = vmatpush3.bf16.msra.mxu0 %v7317_v56  ;;  %6466 = vmatprep.mubr.msk.f32.mxu0 %vm7237_vm1, %v7238_v58 }
 0x35f   :  { %6934 = vmatprep.subr.bf16.mxu0 %v7236_v53 }
 0x362   :  { %6936 = vmatpush3.bf16.msra.mxu0 %v7324_v59 }
 0x363   :  { %6469 = vmatprep.subr.mxu0 %v7238_v58 }
 0x365   :  { %6467 = vmatmul.mubr.f32.vlgmr.msra.gmra.mrb[6].mxu0 %v1589_v2 }
 0x366   :  { %6470 = vmatpush3.msra.mxu0 %v7381_v19  ;;  %6471 = vmatprep.mubr.msk.f32.mxu0 %vm7237_vm1, %v7238_v58 }
 0x367   :  { %6961 = vmatprep.subr.bf16.mxu0 %v7236_v53 }
 0x438   :  { %v2001_v7 = vpop.f32.mrb[6].mxu0 }
 0x439   :  { %v2005_v8 = vmul.f32 0.00390625, %v2001_v7  ;;  %v6468_v9 = vpop.f32.mrb[7].mxu0 }
 0x43b   :  { %v2006_v10 = vadd.f32 1e-05, %v2005_v8 }
 0x43d   :  { %7228 = vrsqrt.f32 %v2006_v10 }
 0x447   :  { %v7229_v11 = vpop.eup %7228 }
 0x448   :  { %v2009_v12 = vsel %vm1046_vm4, %v7229_v11, 0 }
 0x449   :  { %v2077_v13 = vand.u32 4294901760, %v2009_v12 }
 0x44b   :  { %v2078_v14 = vsub.f32 %v2009_v12, %v2077_v13  ;;  %6477 = vmatmul.mubr.f32.vlgmr.msra.gmra.mrb[2].mxu1 %v2077_v13 }
 0x44c   :  { %6480 = vmatpush3.msra.mxu1 %v7385_v20  ;;  %6481 = vmatprep.mubr.msk.f32.mxu1 %vm7237_vm1, %v7238_v58 }
 0x44d   :  { %v2079_v15 = vand.u32 4294901760, %v2078_v14  ;;  %6484 = vmatprep.subr.mxu1 %v7238_v58 }
 0x44f   :  { %v2080_v16 = vsub.f32 %v2078_v14, %v2079_v15 }
 0x451   :  { %v2081_v17 = vand.u32 4294901760, %v2080_v16 }
 0x453   :  { %6472 = vmatmul.mubr.f32.vlgmr.msra.gmra.mrb[8].mxu0 %v2081_v17  ;;  %6482 = vmatmul.mubr.f32.vlgmr.msra.gmra.mrb[2].mxu1 %v2078_v14 }
 0x454   :  { %6485 = vmatpush3.msra.mxu1 %v7381_v19  ;;  %6486 = vmatprep.mubr.msk.f32.mxu1 %vm7237_vm1, %v7238_v58 }
 0x455   :  { %6489 = vmatprep.subr.mxu1 %v7238_v58  ;;  %6963 = vmatpush3.bf16.msra.mxu0 %v7317_v56 }
 0x456   :  { %6964 = vmatprep.subr.bf16.mxu0 %v7236_v53  ;;  %6549 = vmatprep.mubr.msk.f32.mxu0 %vm7237_vm1, %v7238_v58 }
 0x459   :  { %6966 = vmatpush3.bf16.msra.mxu0 %v7324_v59 }
 0x45a   :  { %6967 = vmatprep.subr.bf16.mxu0 %v7236_v53 }
 0x45b   :  { %6487 = vmatmul.mubr.f32.vlgmr.msra.gmra.mrb[2].mxu1 %v2079_v15 }
 0x45c   :  { %6490 = vmatpush3.msra.mxu1 %v7389_v21  ;;  %6491 = vmatprep.mubr.msk.f32.mxu1 %vm7237_vm1, %v7238_v58 }
 0x45d   :  { %6494 = vmatprep.subr.mxu1 %v7238_v58 }
 0x463   :  { %6492 = vmatmul.mubr.f32.vlgmr.msra.gmra.mrb[2].mxu1 %v2077_v13 }
 0x464   :  { %6495 = vmatpush3.msra.mxu1 %v7381_v19  ;;  %6496 = vmatprep.mubr.msk.f32.mxu1 %vm7237_vm1, %v7238_v58 }
 0x46b   :  { %6497 = vmatmul.mubr.f32.vlgmr.msra.gmra.mrb[2].mxu1 %v2077_v13 }
 0x46c   :  { %6503 = vmatprep.mubr.f32.mxu1 %v2551_v28 }
 0x526   :  { %v2083_v29 = vpop.f32.mrb[8].mxu0 }
 0x527   :  { %v6473_v30 = vpop.f32.mrb[9].mxu0 }
 0x53e   :  { %v2453_v34 = vpop.f32.mrb[2].mxu1 }
 0x53f   :  { %v7106_v35 = vadd.f32 %v2453_v34, %v2083_v29  ;;  %v6498_v36 = vpop.f32.mrb[3].mxu1 }
 0x541   :  { %v2460_v37 = vrot.slane %v7106_v35, %v7424_v38 }
 0x543   :  { %v2461_v44 = vmul.f32 %v2460_v37, %v7428_v42  ;;  %v2462_v45 = vmul.f32 %v2460_v37, %v7431_v43  ;;  %v2561_v43 = vand.u32 4294901760, %v2560_v0 }
 0x545   :  { %v2465_v48 = vmul.f32 %v2463_v40, %v2461_v44  ;;  %v2466_v49 = vmul.f32 %v2464_v41, %v2462_v45 }
 0x547   :  { %v2469_v52 = vadd.f32 %v2467_v46, %v2465_v48  ;;  %v2470_v54 = vadd.f32 %v2468_v47, %v2466_v49 }
 0x549   :  { %v2481_v55 = vand.u32 4294901760, %v2469_v52  ;;  %v2484_v1 = vand.u32 4294901760, %v2470_v54 }
 0x54b   :  { %v6937_v2 = vpack.c.bf16 %v2484_v1, %v2481_v55  ;;  %v2569_v42 = vsub.f32 %v2469_v52, %v2481_v55  ;;  %v2576_v3 = vsub.f32 %v2470_v54, %v2484_v1 }
 0x54d   :  { %6938 = vmatprep.subr.bf16.mxu1 %v6937_v2  ;;  %v2570_v4 = vand.u32 4294901760, %v2569_v42  ;;  %v2577_v5 = vand.u32 4294901760, %v2576_v3  ;;  %v6945_v11 = vpack.c.bf16 %v2576_v3, %v2569_v42 }
 0x54e   :  { %6940 = vmatpush3.bf16.msra.mxu1 %v6937_v2 }
 0x54f   :  { %v2571_v6 = vsub.f32 %v2569_v42, %v2570_v4  ;;  %v2578_v7 = vsub.f32 %v2576_v3, %v2577_v5  ;;  %v6953_v12 = vpack.c.bf16 %v2577_v5, %v2570_v4 }
 0x551   :  { %6504 = vmatmul.mubr.f32.vlgmr.msra.gmra.mrb[4].mxu1 %v2561_v43  ;;  %v2572_v8 = vand.u32 4294901760, %v2571_v6  ;;  %v2579_v9 = vand.u32 4294901760, %v2578_v7 }
 0x552   :  { %6510 = vmatprep.mubr.f32.mxu1 %v7500_v24 }
 0x553   :  { %v6941_v10 = vpack.c.bf16 %v2579_v9, %v2572_v8 }
 0x555   :  { %6942 = vmatprep.subr.bf16.mxu1 %v6941_v10 }
 0x556   :  { %6944 = vmatpush3.bf16.msra.mxu1 %v6941_v10 }
 0x557   :  { %6946 = vmatprep.subr.bf16.mxu1 %v6945_v11 }
 0x559   :  { %6511 = vmatmul.mubr.f32.vlgmr.msra.gmra.mrb[4].mxu1 %v2557_v33 }
 0x55a   :  { %6948 = vmatpush3.bf16.msra.mxu1 %v6945_v11  ;;  %6517 = vmatprep.mubr.f32.mxu1 %v2548_v25 }
 0x55b   :  { %6950 = vmatprep.subr.bf16.mxu1 %v6937_v2 }
 0x561   :  { %6518 = vmatmul.mubr.f32.vlgmr.msra.gmra.mrb[4].mxu1 %v2558_v39 }
 0x562   :  { %6952 = vmatpush3.bf16.msra.mxu1 %v6937_v2  ;;  %6524 = vmatprep.mubr.f32.mxu1 %v2549_v26 }
 0x563   :  { %6954 = vmatprep.subr.bf16.mxu1 %v6953_v12 }
 0x569   :  { %6525 = vmatmul.mubr.f32.vlgmr.msra.gmra.mrb[4].mxu1 %v2559_v51 }
 0x56a   :  { %6956 = vmatpush3.bf16.msra.mxu1 %v6953_v12  ;;  %6531 = vmatprep.mubr.f32.mxu1 %v7500_v24 }
 0x56b   :  { %6958 = vmatprep.subr.bf16.mxu1 %v6937_v2 }
 0x571   :  { %6532 = vmatmul.mubr.f32.vlgmr.msra.gmra.mrb[4].mxu1 %v2557_v33 }
 0x572   :  { %6960 = vmatpush3.bf16.msra.mxu1 %v6937_v2  ;;  %6538 = vmatprep.mubr.f32.mxu1 %v7500_v24 }
 0x573   :  { %6607 = vmatprep.subr.mxu1 %v7238_v58 }
 0x579   :  { %6539 = vmatmul.mubr.f32.vlgmr.msra.gmra.mrb[4].mxu1 %v2557_v33 }
 0x57a   :  { %6608 = vmatpush3.msra.mxu1 %v7381_v19  ;;  %6609 = vmatprep.mubr.msk.f32.mxu1 %vm7237_vm1, %v7238_v58 }
 0x57b   :  { %6612 = vmatprep.subr.mxu1 %v7238_v58 }
 0x64c   :  { %v7530_v13 = vpop.f32.mrb[4].mxu1 }
 0x64d   :  { %v2983_v14 = vsel %vm547_vm2, %v7530_v13, 0.0  ;;  %v7534_v15 = vpop.f32.mrb[5].mxu1 }
 0x64e   :  { %v2982_v16 = vsel %vm547_vm2, %v7534_v15, 0.0 }
 0x64f   :  { %v2984_v17 = vadd.f32 %v2983_v14, %v2982_v16 }
 0x651   :  { %v2985_v18 = vrot.slane %v2984_v17, 4 }
 0x653   :  { %v2986_v22 = vadd.f32 %v2985_v18, %v2984_v17 }
 0x655   :  { %v2987_v24 = vrot.slane %v2986_v22, 2 }
 0x657   :  { %v2988_v25 = vadd.f32 %v2987_v24, %v2986_v22 }
 0x659   :  { %v2989_v26 = vrot.slane %v2988_v25, 1 }
 0x65b   :  { %v2990_v27 = vadd.f32 %v2989_v26, %v2988_v25 }
 0x65d   :  { %v2992_v28 = vsel %vm547_vm2, %v2990_v27, 0 }
 0x65e   :  { %v3063_v29 = vand.u32 4294901760, %v2992_v28 }
 0x660   :  { %v3064_v30 = vsub.f32 %v2992_v28, %v3063_v29 }
 0x662   :  { %v3065_v31 = vand.u32 4294901760, %v3064_v30 }
 0x664   :  { %v3066_v32 = vsub.f32 %v3064_v30, %v3065_v31 }
 0x666   :  { %v3067_v33 = vand.u32 4294901760, %v3066_v32 }
 0x668   :  { %6550 = vmatmul.mubr.f32.vlgmr.msra.gmra.mrb[10].mxu0 %v3067_v33 }
 0x669   :  { %6969 = vmatpush3.bf16.msra.mxu0 %v7311_v50  ;;  %6560 = vmatprep.mubr.msk.f32.mxu0 %vm7237_vm1, %v7238_v58 }
 0x66a   :  { %6970 = vmatprep.subr.bf16.mxu0 %v7236_v53 }
 0x66d   :  { %6972 = vmatpush3.bf16.msra.mxu0 %v7319_v57 }
 0x66e   :  { %6973 = vmatprep.subr.bf16.mxu0 %v7236_v53 }
 0x670   :  { %6561 = vmatmul.mubr.f32.vlgmr.msra.gmra.mrb[10].mxu0 %v3063_v29 }
 0x671   :  { %6975 = vmatpush3.bf16.msra.mxu0 %v7328_v60  ;;  %6571 = vmatprep.mubr.msk.f32.mxu0 %vm7237_vm1, %v7238_v58 }
 0x672   :  { %6976 = vmatprep.subr.bf16.mxu0 %v7236_v53 }
 0x675   :  { %6978 = vmatpush3.bf16.msra.mxu0 %v7334_v61 }
 0x676   :  { %6979 = vmatprep.subr.bf16.mxu0 %v7236_v53 }
 0x678   :  { %6572 = vmatmul.mubr.f32.vlgmr.msra.gmra.mrb[10].mxu0 %v3064_v30 }
 0x679   :  { %6981 = vmatpush3.bf16.msra.mxu0 %v7317_v56  ;;  %6582 = vmatprep.mubr.msk.f32.mxu0 %vm7237_vm1, %v7238_v58 }
 0x67a   :  { %6982 = vmatprep.subr.bf16.mxu0 %v7236_v53 }
 0x67d   :  { %6984 = vmatpush3.bf16.msra.mxu0 %v7324_v59 }
 0x67e   :  { %6985 = vmatprep.subr.bf16.mxu0 %v7236_v53 }
 0x680   :  { %6583 = vmatmul.mubr.f32.vlgmr.msra.gmra.mrb[10].mxu0 %v3065_v31 }
 0x681   :  { %6987 = vmatpush3.bf16.msra.mxu0 %v7337_v62  ;;  %6593 = vmatprep.mubr.msk.f32.mxu0 %vm7237_vm1, %v7238_v58 }
 0x682   :  { %6988 = vmatprep.subr.bf16.mxu0 %v7236_v53 }
 0x685   :  { %6990 = vmatpush3.bf16.msra.mxu0 %v7339_v63 }
 0x686   :  { %6991 = vmatprep.subr.bf16.mxu0 %v7236_v53 }
 0x688   :  { %6594 = vmatmul.mubr.f32.vlgmr.msra.gmra.mrb[10].mxu0 %v3063_v29 }
 0x689   :  { %6993 = vmatpush3.bf16.msra.mxu0 %v7317_v56  ;;  %6604 = vmatprep.mubr.msk.f32.mxu0 %vm7237_vm1, %v7238_v58 }
 0x68a   :  { %6994 = vmatprep.subr.bf16.mxu0 %v7236_v53 }
 0x68d   :  { %6996 = vmatpush3.bf16.msra.mxu0 %v7324_v59 }
 0x68e   :  { %6703 = vmatprep.subr.mxu0 %v7238_v58 }
 0x690   :  { %6605 = vmatmul.mubr.f32.vlgmr.msra.gmra.mrb[10].mxu0 %v3063_v29 }
 0x691   :  { %6704 = vmatpush3.msra.mxu0 %v7381_v19  ;;  %6705 = vmatprep.mubr.msk.f32.mxu0 %vm7237_vm1, %v7238_v58 }
 0x692   :  { %6708 = vmatprep.subr.mxu0 %v7238_v58 }
 0x763   :  { %v3475_v34 = vpop.f32.mrb[10].mxu0 }
 0x764   :  { %v3479_v35 = vmul.f32 0.00390625, %v3475_v34  ;;  %v6606_v36 = vpop.f32.mrb[11].mxu0 }
 0x765   :  { %v5986_v36 = vld [vmem:[%s7729_s2 + $0x18] sm:$0xff] }
 0x766   :  { %v3481_v37 = vsel %vm1046_vm4, %v3479_v35, 0  ;;  %v5985_v35 = vld [vmem:[%s7729_s2 + $0x10] sm:$0xff] }
 0x767   :  { %v3549_v39 = vand.u32 4294901760, %v3481_v37 }
 0x769   :  { %v3550_v40 = vsub.f32 %v3481_v37, %v3549_v39 }
 0x76b   :  { %v3551_v41 = vand.u32 4294901760, %v3550_v40 }
 0x76d   :  { %v3552_v44 = vsub.f32 %v3550_v40, %v3551_v41 }
 0x76f   :  { %v3553_v45 = vand.u32 4294901760, %v3552_v44 }
 0x771   :  { %6610 = vmatmul.mubr.f32.vlgmr.msra.gmra.mrb[6].mxu1 %v3553_v45 }
 0x772   :  { %6613 = vmatpush3.msra.mxu1 %v7393_v23  ;;  %6614 = vmatprep.mubr.msk.f32.mxu1 %vm7237_vm1, %v7238_v58 }
 0x773   :  { %6617 = vmatprep.subr.mxu1 %v7238_v58 }
 0x779   :  { %6615 = vmatmul.mubr.f32.vlgmr.msra.gmra.mrb[6].mxu1 %v3549_v39 }
 0x77a   :  { %6618 = vmatpush3.msra.mxu1 %v7385_v20  ;;  %6619 = vmatprep.mubr.msk.f32.mxu1 %vm7237_vm1, %v7238_v58 }
 0x77b   :  { %6622 = vmatprep.subr.mxu1 %v7238_v58 }
 0x781   :  { %6620 = vmatmul.mubr.f32.vlgmr.msra.gmra.mrb[6].mxu1 %v3550_v40  ;;  %v5987_v40 = vld [vmem:[%s7730_s3 + $0x10] sm:$0xff] }
 0x782   :  { %6623 = vmatpush3.msra.mxu1 %v7381_v19  ;;  %6624 = vmatprep.mubr.msk.f32.mxu1 %vm7237_vm1, %v7238_v58 }
 0x783   :  { %6627 = vmatprep.subr.mxu1 %v7238_v58 }
 0x789   :  { %6625 = vmatmul.mubr.f32.vlgmr.msra.gmra.mrb[6].mxu1 %v3551_v41 }
 0x78a   :  { %6628 = vmatpush3.msra.mxu1 %v7389_v21  ;;  %6629 = vmatprep.mubr.msk.f32.mxu1 %vm7237_vm1, %v7238_v58 }
 0x78b   :  { %6632 = vmatprep.subr.mxu1 %v7238_v58 }
 0x791   :  { %6630 = vmatmul.mubr.f32.vlgmr.msra.gmra.mrb[6].mxu1 %v3549_v39 }
 0x792   :  { %6633 = vmatpush3.msra.mxu1 %v7381_v19  ;;  %6634 = vmatprep.mubr.msk.f32.mxu1 %vm7237_vm1, %v7238_v58 }
 0x793   :  { %6997 = vmatprep.subr.bf16.mxu1 %v7236_v53 }
 0x799   :  { %6635 = vmatmul.mubr.f32.vlgmr.msra.gmra.mrb[6].mxu1 %v3549_v39 }
 0x79a   :  { %6999 = vmatpush3.bf16.msra.mxu1 %v7317_v56  ;;  %6645 = vmatprep.mubr.msk.f32.mxu1 %vm7237_vm1, %v7238_v58 }
 0x79b   :  { %7000 = vmatprep.subr.bf16.mxu1 %v7236_v53 }
 0x79e   :  { %7002 = vmatpush3.bf16.msra.mxu1 %v7324_v59 }
 0x79f   :  { %7003 = vmatprep.subr.bf16.mxu1 %v7236_v53 }
 0x86c   :  { %v3925_v46 = vpop.f32.mrb[6].mxu1 }
 0x86d   :  { %v3932_v47 = vrot.slane %v3925_v46, %v7424_v38  ;;  %v6636_v48 = vpop.f32.mrb[7].mxu1 }
 0x86f   :  { %v7602_v49 = vsub.f32 %v7534_v15, %v3932_v47  ;;  %v7605_v51 = vsub.f32 %v7530_v13, %v3932_v47 }
 0x871   :  { %v3935_v52 = vmul.f32 %v7602_v49, %v7602_v49  ;;  %v3936_v54 = vmul.f32 %v7605_v51, %v7605_v51 }
 0x873   :  { %v3937_v55 = vsel %vm547_vm2, %v3935_v52, 0.0  ;;  %v3938_v1 = vsel %vm547_vm2, %v3936_v54, 0.0 }
 0x874   :  { %v3939_v0 = vadd.f32 %v3938_v1, %v3937_v55 }
 0x876   :  { %v3940_v2 = vrot.slane %v3939_v0, 4 }
 0x878   :  { %v3941_v42 = vadd.f32 %v3940_v2, %v3939_v0 }
 0x87a   :  { %v3942_v3 = vrot.slane %v3941_v42, 2 }
 0x87c   :  { %v3943_v43 = vadd.f32 %v3942_v3, %v3941_v42 }
 0x87e   :  { %v3944_v4 = vrot.slane %v3943_v43, 1 }
 0x880   :  { %v3945_v5 = vadd.f32 %v3944_v4, %v3943_v43 }
 0x882   :  { %v3947_v6 = vsel %vm547_vm2, %v3945_v5, 0 }
 0x883   :  { %v4018_v7 = vand.u32 4294901760, %v3947_v6 }
 0x885   :  { %v4019_v8 = vsub.f32 %v3947_v6, %v4018_v7 }
 0x887   :  { %v4020_v9 = vand.u32 4294901760, %v4019_v8 }
 0x889   :  { %v4021_v10 = vsub.f32 %v4019_v8, %v4020_v9 }
 0x88b   :  { %v4022_v11 = vand.u32 4294901760, %v4021_v10  ;;  %v5963_v10 = vld [vmem:[%s7732_s5 + $0x8] sm:$0x3] }
 0x88d   :  { %6646 = vmatmul.mubr.f32.vlgmr.msra.gmra.mrb[8].mxu1 %v4022_v11 }
 0x88e   :  { %7005 = vmatpush3.bf16.msra.mxu1 %v7311_v50  ;;  %6656 = vmatprep.mubr.msk.f32.mxu1 %vm7237_vm1, %v7238_v58 }
 0x88f   :  { %7006 = vmatprep.subr.bf16.mxu1 %v7236_v53 }
 0x892   :  { %7008 = vmatpush3.bf16.msra.mxu1 %v7319_v57 }
 0x893   :  { %7009 = vmatprep.subr.bf16.mxu1 %v7236_v53 }
 0x895   :  { %6657 = vmatmul.mubr.f32.vlgmr.msra.gmra.mrb[8].mxu1 %v4018_v7 }
 0x896   :  { %7011 = vmatpush3.bf16.msra.mxu1 %v7328_v60  ;;  %6667 = vmatprep.mubr.msk.f32.mxu1 %vm7237_vm1, %v7238_v58 }
 0x897   :  { %7012 = vmatprep.subr.bf16.mxu1 %v7236_v53 }
 0x89a   :  { %7014 = vmatpush3.bf16.msra.mxu1 %v7334_v61 }
 0x89b   :  { %7015 = vmatprep.subr.bf16.mxu1 %v7236_v53 }
 0x89d   :  { %6668 = vmatmul.mubr.f32.vlgmr.msra.gmra.mrb[8].mxu1 %v4019_v8  ;;  %v7239_v8 = vmov 0  }
 0x89e   :  { %7017 = vmatpush3.bf16.msra.mxu1 %v7317_v56  ;;  %6678 = vmatprep.mubr.msk.f32.mxu1 %vm7237_vm1, %v7238_v58 }
 0x89f   :  { %7018 = vmatprep.subr.bf16.mxu1 %v7236_v53  ;;  %7227 = vset.pattern.permute.xlu0 %v7239_v8 }
 0x8a2   :  { %7020 = vmatpush3.bf16.msra.mxu1 %v7324_v59 }
 0x8a3   :  { %7021 = vmatprep.subr.bf16.mxu1 %v7236_v53 }
 0x8a5   :  { %6679 = vmatmul.mubr.f32.vlgmr.msra.gmra.mrb[8].mxu1 %v4020_v9  ;;  %v5962_v9 = vld [vmem:[%s7732_s5] sm:$0xff] }
 0x8a6   :  { %7023 = vmatpush3.bf16.msra.mxu1 %v7337_v62  ;;  %6689 = vmatprep.mubr.msk.f32.mxu1 %vm7237_vm1, %v7238_v58 }
 0x8a7   :  { %7024 = vmatprep.subr.bf16.mxu1 %v7236_v53  ;;  %5966 = vperm.xlu0 %7227, %v5962_v9  }
 0x8aa   :  { %7026 = vmatpush3.bf16.msra.mxu1 %v7339_v63 }
 0x8ab   :  { %7027 = vmatprep.subr.bf16.mxu1 %v7236_v53  ;;  %5971 = vperm.xlu0 %7227, %v5963_v10  }
 0x8ad   :  { %6690 = vmatmul.mubr.f32.vlgmr.msra.gmra.mrb[8].mxu1 %v4018_v7 }
 0x8ae   :  { %7029 = vmatpush3.bf16.msra.mxu1 %v7317_v56  ;;  %6700 = vmatprep.mubr.msk.f32.mxu1 %vm7237_vm1, %v7238_v58 }
 0x8af   :  { %7030 = vmatprep.subr.bf16.mxu1 %v7236_v53 }
 0x8b2   :  { %7032 = vmatpush3.bf16.msra.mxu1 %v7324_v59 }
 0x8b3   :  { %7058 = vmatprep.subr.bf16.mxu1 %v7317_v56 }
 0x8b5   :  { %6701 = vmatmul.mubr.f32.vlgmr.msra.gmra.mrb[8].mxu1 %v4018_v7 }
 0x8b6   :  { %7060 = vmatpush3.bf16.msra.mxu1 %v7317_v56 }
 0x8b7   :  { %7062 = vmatprep.subr.bf16.mxu1 %v7324_v59 }
 0x8ba   :  { %7064 = vmatpush3.bf16.msra.mxu1 %v7324_v59 }
 0x8bb   :  { %7066 = vmatprep.subr.bf16.mxu1 %v7311_v50 }
 0x988   :  { %v4430_v12 = vpop.f32.mrb[8].mxu1 }
 0x989   :  { %v4434_v13 = vmul.f32 0.00390625, %v4430_v12  ;;  %v6702_v14 = vpop.f32.mrb[9].mxu1 }
 0x98b   :  { %v4435_v15 = vadd.f32 1e-05, %v4434_v13 }
 0x98d   :  { %7230 = vrsqrt.f32 %v4435_v15 }
 0x997   :  { %v7231_v16 = vpop.eup %7230 }
 0x998   :  { %v4438_v53 = vsel %vm1046_vm4, %v7231_v16, 0 }
 0x999   :  { %v4506_v17 = vand.u32 4294901760, %v4438_v53 }
 0x99b   :  { %v4507_v18 = vsub.f32 %v4438_v53, %v4506_v17 }
 0x99d   :  { %v4508_v22 = vand.u32 4294901760, %v4507_v18 }
 0x99f   :  { %v4509_v24 = vsub.f32 %v4507_v18, %v4508_v22 }
 0x9a1   :  { %v4510_v25 = vand.u32 4294901760, %v4509_v24 }
 0x9a3   :  { %6706 = vmatmul.mubr.f32.vlgmr.msra.gmra.mrb[12].mxu0 %v4510_v25 }
 0x9a4   :  { %6709 = vmatpush3.msra.mxu0 %v7393_v23  ;;  %6710 = vmatprep.mubr.msk.f32.mxu0 %vm7237_vm1, %v7238_v58 }
 0x9a5   :  { %6713 = vmatprep.subr.mxu0 %v7238_v58 }
 0x9ab   :  { %6711 = vmatmul.mubr.f32.vlgmr.msra.gmra.mrb[12].mxu0 %v4506_v17 }
 0x9ac   :  { %6714 = vmatpush3.msra.mxu0 %v7385_v20  ;;  %6715 = vmatprep.mubr.msk.f32.mxu0 %vm7237_vm1, %v7238_v58  ;;  %v4902_v20 = vld [vmem:[%s7731_s4] sm:$0xff] }
 0x9ad   :  { %6718 = vmatprep.subr.mxu0 %v7238_v58  ;;  %v4905_v23 = vsel %vm38_vm0, %v4902_v20, 0 }
 0x9ae   :  { %v4977_v26 = vand.u32 4294901760, %v4905_v23 }
 0x9b3   :  { %6716 = vmatmul.mubr.f32.vlgmr.msra.gmra.mrb[12].mxu0 %v4507_v18 }
 0x9b4   :  { %6719 = vmatpush3.msra.mxu0 %v7381_v19  ;;  %6720 = vmatprep.mubr.msk.f32.mxu0 %vm7237_vm1, %v7238_v58 }
 0x9b5   :  { %6723 = vmatprep.subr.mxu0 %v7238_v58 }
 0x9bb   :  { %6721 = vmatmul.mubr.f32.vlgmr.msra.gmra.mrb[12].mxu0 %v4508_v22 }
 0x9bc   :  { %6724 = vmatpush3.msra.mxu0 %v7389_v21  ;;  %6725 = vmatprep.mubr.msk.f32.mxu0 %vm7237_vm1, %v7238_v58  ;;  %v4978_v21 = vsub.f32 %v4905_v23, %v4977_v26 }
 0x9bd   :  { %6728 = vmatprep.subr.mxu0 %v7238_v58 }
 0x9be   :  { %v4979_v27 = vand.u32 4294901760, %v4978_v21 }
 0x9c0   :  { %v4980_v28 = vsub.f32 %v4978_v21, %v4979_v27 }
 0x9c2   :  { %v4981_v29 = vand.u32 4294901760, %v4980_v28 }
 0x9c3   :  { %6726 = vmatmul.mubr.f32.vlgmr.msra.gmra.mrb[12].mxu0 %v4506_v17 }
 0x9c4   :  { %6729 = vmatpush3.msra.mxu0 %v7381_v19  ;;  %6730 = vmatprep.mubr.msk.f32.mxu0 %vm7237_vm1, %v7238_v58  ;;  %v4903_v19 = vld [vmem:[%s7731_s4 + $0x8] sm:$0x3] }
 0x9c5   :  { %v4908_v30 = vsel %vm38_vm0, %v4903_v19, 0 }
 0x9c6   :  { %v4987_v58 = vand.u32 4294901760, %v4908_v30 }
 0x9c8   :  { %v4988_v34 = vsub.f32 %v4908_v30, %v4987_v58 }
 0x9ca   :  { %v4989_v45 = vand.u32 4294901760, %v4988_v34 }
 0x9cb   :  { %6731 = vmatmul.mubr.f32.vlgmr.msra.gmra.mrb[12].mxu0 %v4506_v17 }
 0x9cc   :  { %6737 = vmatprep.mubr.f32.mxu0 %v4981_v29  ;;  %v4990_v54 = vsub.f32 %v4988_v34, %v4989_v45 }
 0xa9e   :  { %v4882_v31 = vpop.f32.mrb[12].mxu0 }
 0xa9f   :  { %v4889_v32 = vrot.slane %v4882_v31, %v7424_v38  ;;  %v6732_v33 = vpop.f32.mrb[13].mxu0  ;;  %v5988_v38 = vld [vmem:[%s7730_s3 + $0x18] sm:$0xff] }
 0xaa1   :  { %v4890_v37 = vmul.f32 %v4889_v32, %v7602_v49  ;;  %v4891_v39 = vmul.f32 %v4889_v32, %v7605_v51  ;;  %v4991_v51 = vand.u32 4294901760, %v4990_v54 }
 0xaa3   :  { %v4895_v41 = vmul.f32 %v5985_v35, %v4890_v37  ;;  %v4896_v44 = vmul.f32 %v5986_v36, %v4891_v39 }
 0xaa5   :  { %v4900_v46 = vadd.f32 %v5987_v40, %v4895_v41  ;;  %v4901_v47 = vadd.f32 %v5988_v38, %v4896_v44 }
 0xaa7   :  { %v4911_v48 = vand.u32 4294901760, %v4900_v46  ;;  %v4914_v52 = vand.u32 4294901760, %v4901_v47 }
 0xaa9   :  { %v7033_v55 = vpack.c.bf16 %v4914_v52, %v4911_v48  ;;  %v4999_v49 = vsub.f32 %v4900_v46, %v4911_v48  ;;  %v5006_v1 = vsub.f32 %v4901_v47, %v4914_v52 }
 0xaab   :  { %7034 = vmatprep.subr.bf16.mxu0 %v7033_v55  ;;  %v5000_v0 = vand.u32 4294901760, %v4999_v49  ;;  %v5007_v2 = vand.u32 4294901760, %v5006_v1  ;;  %v7041_v6 = vpack.c.bf16 %v5006_v1, %v4999_v49 }
 0xaac   :  { %7036 = vmatpush3.bf16.msra.mxu0 %v7033_v55 }
 0xaad   :  { %v5001_v42 = vsub.f32 %v4999_v49, %v5000_v0  ;;  %v5008_v3 = vsub.f32 %v5006_v1, %v5007_v2  ;;  %v7049_v7 = vpack.c.bf16 %v5007_v2, %v5000_v0 }
 0xaaf   :  { %6738 = vmatmul.mubr.f32.vlgmr.msra.gmra.mrb[14].mxu0 %v4991_v51  ;;  %v5002_v43 = vand.u32 4294901760, %v5001_v42  ;;  %v5009_v4 = vand.u32 4294901760, %v5008_v3 }
 0xab0   :  { %6744 = vmatprep.mubr.f32.mxu0 %v4977_v26 }
 0xab1   :  { %v7037_v5 = vpack.c.bf16 %v5009_v4, %v5002_v43 }
 0xab3   :  { %7038 = vmatprep.subr.bf16.mxu0 %v7037_v5 }
 0xab4   :  { %7040 = vmatpush3.bf16.msra.mxu0 %v7037_v5 }
 0xab5   :  { %7042 = vmatprep.subr.bf16.mxu0 %v7041_v6 }
 0xab7   :  { %6745 = vmatmul.mubr.f32.vlgmr.msra.gmra.mrb[14].mxu0 %v4987_v58 }
 0xab8   :  { %7044 = vmatpush3.bf16.msra.mxu0 %v7041_v6  ;;  %6751 = vmatprep.mubr.f32.mxu0 %v4978_v21 }
 0xab9   :  { %7046 = vmatprep.subr.bf16.mxu0 %v7033_v55 }
 0xabf   :  { %6752 = vmatmul.mubr.f32.vlgmr.msra.gmra.mrb[14].mxu0 %v4988_v34 }
 0xac0   :  { %7048 = vmatpush3.bf16.msra.mxu0 %v7033_v55  ;;  %6758 = vmatprep.mubr.f32.mxu0 %v4979_v27 }
 0xac1   :  { %7050 = vmatprep.subr.bf16.mxu0 %v7049_v7 }
 0xac7   :  { %6759 = vmatmul.mubr.f32.vlgmr.msra.gmra.mrb[14].mxu0 %v4989_v45 }
 0xac8   :  { %7052 = vmatpush3.bf16.msra.mxu0 %v7049_v7  ;;  %6765 = vmatprep.mubr.f32.mxu0 %v4977_v26 }
 0xac9   :  { %7054 = vmatprep.subr.bf16.mxu0 %v7033_v55 }
 0xacf   :  { %6766 = vmatmul.mubr.f32.vlgmr.msra.gmra.mrb[14].mxu0 %v4987_v58 }
 0xad0   :  { %7056 = vmatpush3.bf16.msra.mxu0 %v7033_v55  ;;  %6772 = vmatprep.mubr.f32.mxu0 %v4977_v26 }
 0xad7   :  { %6773 = vmatmul.mubr.f32.vlgmr.msra.gmra.mrb[14].mxu0 %v4987_v58 }
 0xbaa   :  { %v6774_v11 = vpop.f32.mrb[14].mxu0 }
 0xbab   :  { %v5413_v12 = vmul.f32 %v6774_v11, %v6774_v11  ;;  %v5402_v13 = vpop.f32.mrb[15].mxu0 }
 0xbac   :  { %v5412_v14 = vmul.f32 %v5402_v13, %v5402_v13 }
 0xbad   :  { %v5418_v15 = vsel %vm547_vm2, %v5413_v12, 0 }
 0xbae   :  { %v5499_v16 = vand.u32 4294901760, %v5418_v15  ;;  %v5415_v53 = vsel %vm547_vm2, %v5412_v14, 0 }
 0xbaf   :  { %v5489_v17 = vand.u32 4294901760, %v5415_v53 }
 0xbb0   :  { %v5500_v18 = vsub.f32 %v5418_v15, %v5499_v16 }
 0xbb1   :  { %v5490_v22 = vsub.f32 %v5415_v53, %v5489_v17 }
 0xbb2   :  { %v5501_v24 = vand.u32 4294901760, %v5500_v18 }
 0xbb3   :  { %v5491_v25 = vand.u32 4294901760, %v5490_v22 }
 0xbb4   :  { %v5502_v20 = vsub.f32 %v5500_v18, %v5501_v24 }
 0xbb5   :  { %v5492_v23 = vsub.f32 %v5490_v22, %v5491_v25 }
 0xbb6   :  { %v5503_v21 = vand.u32 4294901760, %v5502_v20 }
 0xbb7   :  { %v5493_v26 = vand.u32 4294901760, %v5492_v23 }
 0xbb9   :  { %6783 = vmatprep.mubr.f32.mxu1 %v5493_v26 }
 0xbba   :  { %6784 = vmatmul.mubr.f32.vlgmr.msra.gmra.mrb[10].mxu1 %v5503_v21 }
 0xbbb   :  { %7068 = vmatpush3.bf16.msra.mxu1 %v7311_v50  ;;  %6794 = vmatprep.mubr.f32.mxu1 %v5489_v17 }
 0xbbc   :  { %7070 = vmatprep.subr.bf16.mxu1 %v7319_v57 }
 0xbbf   :  { %7072 = vmatpush3.bf16.msra.mxu1 %v7319_v57 }
 0xbc0   :  { %7074 = vmatprep.subr.bf16.mxu1 %v7328_v60 }
 0xbc2   :  { %6795 = vmatmul.mubr.f32.vlgmr.msra.gmra.mrb[10].mxu1 %v5499_v16 }
 0xbc3   :  { %7076 = vmatpush3.bf16.msra.mxu1 %v7328_v60  ;;  %6805 = vmatprep.mubr.f32.mxu1 %v5490_v22  ;;  %v5967_v60 = vpop.permute.xlu0 %5966 }
 0xbc4   :  { %7078 = vmatprep.subr.bf16.mxu1 %v7334_v61 }
 0xbc7   :  { %7080 = vmatpush3.bf16.msra.mxu1 %v7334_v61 }
 0xbc8   :  { %7082 = vmatprep.subr.bf16.mxu1 %v7317_v56 }
 0xbca   :  { %6806 = vmatmul.mubr.f32.vlgmr.msra.gmra.mrb[10].mxu1 %v5500_v18 }
 0xbcb   :  { %7084 = vmatpush3.bf16.msra.mxu1 %v7317_v56  ;;  %6816 = vmatprep.mubr.f32.mxu1 %v5491_v25 }
 0xbcc   :  { %7086 = vmatprep.subr.bf16.mxu1 %v7324_v59 }
 0xbcf   :  { %7088 = vmatpush3.bf16.msra.mxu1 %v7324_v59 }
 0xbd0   :  { %7090 = vmatprep.subr.bf16.mxu1 %v7337_v62 }
 0xbd2   :  { %6817 = vmatmul.mubr.f32.vlgmr.msra.gmra.mrb[10].mxu1 %v5501_v24 }
 0xbd3   :  { %7092 = vmatpush3.bf16.msra.mxu1 %v7337_v62  ;;  %6827 = vmatprep.mubr.f32.mxu1 %v5489_v17 }
 0xbd4   :  { %7094 = vmatprep.subr.bf16.mxu1 %v7339_v63 }
 0xbd7   :  { %7096 = vmatpush3.bf16.msra.mxu1 %v7339_v63 }
 0xbd8   :  { %7098 = vmatprep.subr.bf16.mxu1 %v7317_v56 }
 0xbda   :  { %6828 = vmatmul.mubr.f32.vlgmr.msra.gmra.mrb[10].mxu1 %v5499_v16 }
 0xbdb   :  { %7100 = vmatpush3.bf16.msra.mxu1 %v7317_v56  ;;  %6838 = vmatprep.mubr.f32.mxu1 %v5489_v17 }
 0xbdc   :  { %7102 = vmatprep.subr.bf16.mxu1 %v7324_v59 }
 0xbdf   :  { %7104 = vmatpush3.bf16.msra.mxu1 %v7324_v59  ;;  %v5972_v59 = vpop.permute.xlu0 %5971 }
 0xbe2   :  { %6839 = vmatmul.mubr.f32.vlgmr.msra.gmra.mrb[10].mxu1 %v5499_v16 }
 0xcb5   :  { %v6840_v50 = vpop.f32.mrb[10].mxu1 }
 0xcb6   :  { %7232 = vrsqrt.f32 %v6840_v50  ;;  %v5938_v57 = vpop.f32.mrb[11].mxu1  ;;  %vm5957_vm5 = vcmp.eq.f32.partialorder %v6840_v50, inf  ;;  %v5960_v28 = vand.u32 2147483648, %v6840_v50  ;;  %vm5959_vm7 = vcmp.eq.f32.partialorder %v6840_v50, 0.0 }
 0xcb7   :  { %7234 = vrsqrt.f32 %v5938_v57  ;;  %vm5950_vm6 = vcmp.eq.f32.partialorder %v5938_v57, inf  ;;  %v5953_v29 = vand.u32 2147483648, %v5938_v57  ;;  %vm5952_vm8 = vcmp.eq.f32.partialorder %v5938_v57, 0.0 }
 0xcc0   :  { %v7233_v61 = vpop.eup %7232 }
 0xcc1   :  { %v7235_v62 = vpop.eup %7234  ;;  %v5956_v27 = vmul.f32 %v7233_v61, %v6840_v50 }
 0xcc2   :  { %v5949_v63 = vmul.f32 %v7235_v62, %v5938_v57 }
 0xcc3   :  { %v5958_v56 = vsel %vm5957_vm5, %v6840_v50, %v5956_v27 }
 0xcc4   :  { %v5951_v19 = vsel %vm5950_vm6, %v5938_v57, %v5949_v63  ;;  %v5961_v30 = vsel %vm5959_vm7, %v5960_v28, %v5958_v56 }
 0xcc5   :  { %v5954_v58 = vsel %vm5952_vm8, %v5953_v29, %v5951_v19  ;;  %v5975_v31 = vadd.f32 %v5972_v59, %v5961_v30 }
 0xcc6   :  { %v5974_v32 = vadd.f32 %v5967_v60, %v5954_v58 }
 0xcc7   :  { %5978 = vst.msk [vmem:[%s7733_s8 + $0x8] sm:$0x3] %vm5977_vm9, %v5975_v31 }
 0xcc8   :  { %5976 = vst.msk [vmem:[%s7733_s8] sm:$0xff] %vm1046_vm4, %v5974_v32 }

</bundles_post_ra>
